<compile_context>
chip_gen: v7x
topology: tpu7x:2x2x1
jax: 0.10.0
libtpu: 0.0.40
codegen_flags: <defaults>
</compile_context>

<pallas_src>
import jax
import jax.numpy as jnp
from jax.experimental import pallas as pl
from jax.experimental.pallas import tpu as pltpu

LANE = 128
SUBLANE = 8
MAX_BATCH_TILE = 512


def _round_up(x, m):
    return ((x + m - 1) // m) * m


# ----------------------------------------------------------------------------
# Kernel: whole fused twin-Q forward for one batch tile.
#   sa_ref : (Bt, P)     zero-padded [state || action]
#   w_ref  : (3, P, P)   zero-padded fused weight slab (layer-major)
#   b_ref  : (3, P)      zero-padded fused bias slab
#   q_ref  : (Bt, P)     cols 0:2 hold [q1, q2], rest is padding
# ----------------------------------------------------------------------------
def _fused_twin_q_kernel(sa_ref, w_ref, b_ref, q_ref):
    x = sa_ref[...]                       # (Bt, P)
    b = b_ref[...]                        # (3, P)

    # layer 0 (fc1 & fc4 fused) + relu
    h = jnp.dot(x, w_ref[0], preferred_element_type=jnp.float32) + b[0:1, :]
    h = jnp.maximum(h, 0.0)
    # layer 1 (fc2 & fc5 fused, block-diagonal) + relu
    h = jnp.dot(h, w_ref[1], preferred_element_type=jnp.float32) + b[1:2, :]
    h = jnp.maximum(h, 0.0)
    # layer 2 (fc3 & fc6 fused, block-diagonal)
    q = jnp.dot(h, w_ref[2], preferred_element_type=jnp.float32) + b[2:3, :]

    q_ref[...] = q.astype(q_ref.dtype)


# ----------------------------------------------------------------------------
# Parameter fusion / padding (one-time, in plain JAX, outside the kernel).
# params holds torch-equivalent nn.Linear weights, already transposed to
# (in_features, out_features), and biases as (1, out_features).
# ----------------------------------------------------------------------------
def fuse_and_pad_params(params, input_dim, hidden_dim):
    H = hidden_dim
    F = 2 * H
    D = input_dim
    P = _round_up(max(D, F, 2), LANE)     # square slab so the 3 layers chain

    # fused (unpadded) weights / biases
    w1f = jnp.concatenate([params["w1"], params["w4"]], axis=1)          # (D, 2H)
    b1f = jnp.concatenate([params["b1"], params["b4"]], axis=1)          # (1, 2H)
    w2f = (jnp.zeros((F, F), jnp.float32)
           .at[:H, :H].set(params["w2"])
           .at[H:, H:].set(params["w5"]))                                # (2H, 2H)
    b2f = jnp.concatenate([params["b2"], params["b5"]], axis=1)          # (1, 2H)
    w3f = (jnp.zeros((F, 2), jnp.float32)
           .at[:H, 0:1].set(params["w3"])
           .at[H:, 1:2].set(params["w6"]))                               # (2H, 2)
    b3f = jnp.concatenate([params["b3"], params["b6"]], axis=1)          # (1, 2)

    # zero-padded slabs
    w_slab = jnp.zeros((3, P, P), jnp.float32)
    w_slab = w_slab.at[0, :D, :F].set(w1f)
    w_slab = w_slab.at[1, :F, :F].set(w2f)
    w_slab = w_slab.at[2, :F, :2].set(w3f)

    b_slab = jnp.zeros((3, P), jnp.float32)
    b_slab = b_slab.at[0, :F].set(b1f[0])
    b_slab = b_slab.at[1, :F].set(b2f[0])
    b_slab = b_slab.at[2, :2].set(b3f[0])
    return w_slab, b_slab


# ----------------------------------------------------------------------------
# Wrapper: pad the batch, pick a batch tile, launch one pallas_call.
# ----------------------------------------------------------------------------
def twin_q_forward(sa, w_slab, b_slab):
    B, D = sa.shape
    P = w_slab.shape[-1]

    Bp = _round_up(B, SUBLANE)
    Bt = Bp if Bp <= MAX_BATCH_TILE else MAX_BATCH_TILE
    Bp = _round_up(Bp, Bt)

    sa_pad = jnp.zeros((Bp, P), jnp.float32).at[:B, :D].set(sa)

    grid = (Bp // Bt,)
    flops = 2 * Bp * P * P * 3
    bytes_accessed = 4 * (sa_pad.size + w_slab.size + b_slab.size + Bp * P)

    q = pl.pallas_call(
        _fused_twin_q_kernel,
        out_shape=jax.ShapeDtypeStruct((Bp, P), jnp.float32),
        grid=grid,
        in_specs=[
            pl.BlockSpec((Bt, P), lambda i: (i, 0)),        # activations: tiled over batch
            pl.BlockSpec((3, P, P), lambda i: (0, 0, 0)),   # weight slab: resident
            pl.BlockSpec((3, P), lambda i: (0, 0)),         # bias slab:   resident
        ],
        out_specs=pl.BlockSpec((Bt, P), lambda i: (i, 0)),
        compiler_params=pltpu.CompilerParams(
            dimension_semantics=("parallel",)),
        cost_estimate=pl.CostEstimate(
            flops=flops, transcendentals=0, bytes_accessed=bytes_accessed),
    )(sa_pad, w_slab, b_slab)

    q1 = q[:B, 0:1]
    q2 = q[:B, 1:2]
    return q1, q2


# ----------------------------------------------------------------------------
# Init (torch.nn.Linear-equivalent U(-k, k), k = 1/sqrt(fan_in)) and reference.
# ----------------------------------------------------------------------------
def _linear_init(key, in_dim, out_dim):
    kw, kb = jax.random.split(key)
    bound = 1.0 / jnp.sqrt(jnp.float32(in_dim))
    w = jax.random.uniform(kw, (in_dim, out_dim), jnp.float32, -bound, bound)
    b = jax.random.uniform(kb, (1, out_dim), jnp.float32, -bound, bound)
    return w, b


def make_params(key, input_dim, hidden_dim):
    keys = jax.random.split(key, 6)
    dims = [(input_dim, hidden_dim), (hidden_dim, hidden_dim), (hidden_dim, 1),
            (input_dim, hidden_dim), (hidden_dim, hidden_dim), (hidden_dim, 1)]
    params = {}
    for i, (k, (di, do)) in enumerate(zip(keys, dims), start=1):
        w, b = _linear_init(k, di, do)
        params[f"w{i}"] = w
        params[f"b{i}"] = b
    return params


def reference_forward(sa, params):
    """Pure-JAX reference of the PyTorch forward."""
    h = jax.nn.relu(sa @ params["w1"] + params["b1"])
    h = jax.nn.relu(h @ params["w2"] + params["b2"])
    q1 = h @ params["w3"] + params["b3"]
    g = jax.nn.relu(sa @ params["w4"] + params["b4"])
    g = jax.nn.relu(g @ params["w5"] + params["b5"])
    q2 = g @ params["w6"] + params["b6"]
    return q1, q2


if __name__ == "__main__":
    key = jax.random.PRNGKey(0)

    # Small multi-agent setup: 2 agents, obs dims [5, 5], action dims [3, 3].
    obs_dim_n = [5, 5]
    action_dim_n = [3, 3]
    critic_hidden_dim = 32
    batch = 8
    input_dim = sum(obs_dim_n) + sum(action_dim_n)   # 16

    k_params, k_state, k_action = jax.random.split(key, 3)
    params = make_params(k_params, input_dim, critic_hidden_dim)
    w_slab, b_slab = fuse_and_pad_params(params, input_dim, critic_hidden_dim)

    # Per-agent state / action lists (as the module receives), then concat (glue).
    state_keys = jax.random.split(k_state, len(obs_dim_n))
    action_keys = jax.random.split(k_action, len(action_dim_n))
    state = [jax.random.normal(sk, (batch, d), jnp.float32)
             for sk, d in zip(state_keys, obs_dim_n)]
    action = [jax.random.normal(ak, (batch, d), jnp.float32)
              for ak, d in zip(action_keys, action_dim_n)]
    sa = jnp.concatenate(state + action, axis=1)      # (B, input_dim)

    q1, q2 = twin_q_forward(sa, w_slab, b_slab)
    q1 = jax.block_until_ready(q1)
    q2 = jax.block_until_ready(q2)

    # Correctness check vs. pure-JAX reference of the torch forward.
    r1, r2 = reference_forward(sa, params)
    assert q1.shape == (batch, 1) and q2.shape == (batch, 1)
    assert jnp.allclose(q1, r1, atol=1e-5, rtol=1e-5)
    assert jnp.allclose(q2, r2, atol=1e-5, rtol=1e-5)

    print("KERNEL_OK")
</pallas_src>

<mosaic_0001>
module attributes {stable_mosaic.version = 11 : i64} {
  func.func @_fused_twin_q_kernel(%arg0: i32, %arg1: memref<8x128xf32, #tpu.memory_space<vmem>>, %arg2: memref<3x128x128xf32, #tpu.memory_space<vmem>>, %arg3: memref<3x128xf32, #tpu.memory_space<vmem>>, %arg4: memref<8x128xf32, #tpu.memory_space<vmem>>) attributes {dimension_semantics = [#tpu.dimension_semantics<parallel>], iteration_bounds = array<i64: 1>, scalar_prefetch = 0 : i64, scratch_operands = 0 : i64, tpu.core_type = #tpu.core_type<tc>, window_params = [{transform_indices = @transform_0, window_bounds = array<i64: 8, 128>}, {pipeline_mode = #tpu.pipeline_mode<synchronous>, transform_indices = @transform_1, window_bounds = array<i64: 3, 128, 128>}, {pipeline_mode = #tpu.pipeline_mode<synchronous>, transform_indices = @transform_2, window_bounds = array<i64: 3, 128>}, {transform_indices = @transform_3, window_bounds = array<i64: 8, 128>}]} {
    %c0 = arith.constant 0 : index
    %c0_0 = arith.constant 0 : index
    %0 = vector.load %arg1[%c0, %c0_0] : memref<8x128xf32, #tpu.memory_space<vmem>>, vector<8x128xf32>
    %c0_1 = arith.constant 0 : index
    %c0_2 = arith.constant 0 : index
    %1 = vector.load %arg3[%c0_1, %c0_2] : memref<3x128xf32, #tpu.memory_space<vmem>>, vector<3x128xf32>
    %c0_3 = arith.constant 0 : index
    %c0_4 = arith.constant 0 : index
    %c0_5 = arith.constant 0 : index
    %2 = vector.load %arg2[%c0_3, %c0_4, %c0_5] : memref<3x128x128xf32, #tpu.memory_space<vmem>>, vector<1x128x128xf32>
    %3 = vector.shape_cast %2 : vector<1x128x128xf32> to vector<128x128xf32>
    %cst = arith.constant dense<0.000000e+00> : vector<8x128xf32>
    %4 = tpu.matmul %0, %3, %cst {dimension_numbers = #tpu.dot_dimension_numbers<[1], [0], [0], [1], [0, 0, 1, 1], [], []>} : vector<8x128xf32>, vector<128x128xf32>, vector<8x128xf32> -> vector<8x128xf32>
    %5 = vector.extract_strided_slice %1 {offsets = [0, 0], sizes = [1, 128], strides = [1, 1]} : vector<3x128xf32> to vector<1x128xf32>
    %6 = vector.broadcast %5 : vector<1x128xf32> to vector<8x128xf32>
    %7 = arith.addf %4, %6 : vector<8x128xf32>
    %cst_6 = arith.constant 0.000000e+00 : f32
    %8 = vector.broadcast %cst_6 : f32 to vector<8x128xf32>
    %9 = arith.maximumf %7, %8 : vector<8x128xf32>
    %c1 = arith.constant 1 : index
    %c0_7 = arith.constant 0 : index
    %c0_8 = arith.constant 0 : index
    %10 = vector.load %arg2[%c1, %c0_7, %c0_8] : memref<3x128x128xf32, #tpu.memory_space<vmem>>, vector<1x128x128xf32>
    %11 = vector.shape_cast %10 : vector<1x128x128xf32> to vector<128x128xf32>
    %cst_9 = arith.constant dense<0.000000e+00> : vector<8x128xf32>
    %12 = tpu.matmul %9, %11, %cst_9 {dimension_numbers = #tpu.dot_dimension_numbers<[1], [0], [0], [1], [0, 0, 1, 1], [], []>} : vector<8x128xf32>, vector<128x128xf32>, vector<8x128xf32> -> vector<8x128xf32>
    %13 = vector.extract_strided_slice %1 {offsets = [1, 0], sizes = [1, 128], strides = [1, 1]} : vector<3x128xf32> to vector<1x128xf32>
    %14 = vector.broadcast %13 : vector<1x128xf32> to vector<8x128xf32>
    %15 = arith.addf %12, %14 : vector<8x128xf32>
    %cst_10 = arith.constant 0.000000e+00 : f32
    %16 = vector.broadcast %cst_10 : f32 to vector<8x128xf32>
    %17 = arith.maximumf %15, %16 : vector<8x128xf32>
    %c2 = arith.constant 2 : index
    %c0_11 = arith.constant 0 : index
    %c0_12 = arith.constant 0 : index
    %18 = vector.load %arg2[%c2, %c0_11, %c0_12] : memref<3x128x128xf32, #tpu.memory_space<vmem>>, vector<1x128x128xf32>
    %19 = vector.shape_cast %18 : vector<1x128x128xf32> to vector<128x128xf32>
    %cst_13 = arith.constant dense<0.000000e+00> : vector<8x128xf32>
    %20 = tpu.matmul %17, %19, %cst_13 {dimension_numbers = #tpu.dot_dimension_numbers<[1], [0], [0], [1], [0, 0, 1, 1], [], []>} : vector<8x128xf32>, vector<128x128xf32>, vector<8x128xf32> -> vector<8x128xf32>
    %21 = vector.extract_strided_slice %1 {offsets = [2, 0], sizes = [1, 128], strides = [1, 1]} : vector<3x128xf32> to vector<1x128xf32>
    %22 = vector.broadcast %21 : vector<1x128xf32> to vector<8x128xf32>
    %23 = arith.addf %20, %22 : vector<8x128xf32>
    %c0_14 = arith.constant 0 : index
    %c0_15 = arith.constant 0 : index
    %24 = vector.load %arg4[%c0_14, %c0_15] : memref<8x128xf32, #tpu.memory_space<vmem>>, vector<8x128xf32>
    tpu.vector_store %arg4[%c0_14, %c0_15], %23 {strides = array<i32>} : memref<8x128xf32, #tpu.memory_space<vmem>>, vector<8x128xf32>,
    return
  }
  func.func @transform_0(%arg0: i32) -> (i32, i32) {
    %c0_i32 = arith.constant 0 : i32
    %c0_i32_0 = arith.constant 0 : i32
    return %arg0, %c0_i32 : i32, i32
  }
  func.func @transform_1(%arg0: i32) -> (i32, i32, i32) {
    %c0_i32 = arith.constant 0 : i32
    %c0_i32_0 = arith.constant 0 : i32
    %c0_i32_1 = arith.constant 0 : i32
    %c0_i32_2 = arith.constant 0 : i32
    return %c0_i32, %c0_i32_0, %c0_i32_1 : i32, i32, i32
  }
  func.func @transform_2(%arg0: i32) -> (i32, i32) {
    %c0_i32 = arith.constant 0 : i32
    %c0_i32_0 = arith.constant 0 : i32
    %c0_i32_1 = arith.constant 0 : i32
    return %c0_i32, %c0_i32_0 : i32, i32
  }
  func.func @transform_3(%arg0: i32) -> (i32, i32) {
    %c0_i32 = arith.constant 0 : i32
    %c0_i32_0 = arith.constant 0 : i32
    return %arg0, %c0_i32 : i32, i32
  }
}

</mosaic_0001>

<bundles_post_ra>
// kernel: tpu_custom_call.1
= control target key start
LH: loop header
LB: loop body
LE: loop exit
PB: predicated region body
PF: predicated region fallthrough
CT: control target
= control target key end

     0   :  { %8 = vsyncpa [#allocation3], 0  ;;  %s746_s0 = inlined_call_operand.hbm [shape: f32[8,128], index: 0, kind: input, shape index: {}]   ;;  %s747_s1 = inlined_call_operand.hbm [shape: f32[3,128,128], index: 1, kind: input, shape index: {}]   ;;  %s748_s2 = inlined_call_operand.vmem [shape: f32[3,128], index: 2, kind: input, shape index: {}]   ;;  %s749_s3 = inlined_call_operand.hbm [shape: f32[8,128], index: 3, kind: output, shape index: {}]  }
   0x1   :  { %9 = vsyncpa [#allocation6], 0 }
   0x2   :  { %10 = vsyncpa [#allocation4], 0  ;;  %s642_s12 = smov [#allocation2]   ;;  %s643_s14 = smov [#allocation5]  }
   0x3   :  { %s17_s13 = sshll.u32 %s642_s12, 4  ;;  %s26_s15 = sshll.u32 %s643_s14, 4  ;;  %s18_s13 = int_to_ptr.vmem [resolvable:$true] %s17_s13  ;;  %s670_s15 = int_to_ptr.vmem [resolvable:$true] %s26_s15 }
   0x4   :  { %s570_s18 = scalar_lea.hbm %s746_s0, 128 }
   0x5   :  { %p571_p0 = scmp.ne.s32.totalorder %s746_s0, %s570_s18  ;;  %p574_p1 = scmp.lt.u32.totalorder %s570_s18, %s746_s0 }
   0x7   :  { %p576_p2 = pnand %p574_p1, %p571_p0 }
   0x9   :  { %579 = shalt.err (!%p576_p2)
}
   0xa   :  { %s580_s23 = scalar_lea.vmem %s18_s13, 128  ;;  %p585_p4 = scmp.lt.s32.totalorder %s18_s13, %s18_s13 }
   0xb   :  { %p581_p3 = scmp.ne.s32.totalorder %s18_s13, %s580_s23  ;;  %p586_p5 = scmp.lt.s32.totalorder %s580_s23, %s580_s23 }
   0xd   :  { %p587_p6 = por %p586_p5, %p585_p4 }
   0xf   :  { %p588_p7 = pnand %p587_p6, %p581_p3 }
  0x11   :  { %591 = shalt.err (!%p588_p7)
}
  0x12   :  { %20 = dma.hbm_to_vmem [thread:$0]  %s746_s0, 128, %s18_s13, [#allocation3]  }
  0x13   :  { %s592_s28 = scalar_lea.hbm %s747_s1, 6144 }
  0x14   :  { %p593_p8 = scmp.ne.s32.totalorder %s747_s1, %s592_s28  ;;  %p596_p9 = scmp.lt.u32.totalorder %s592_s28, %s747_s1 }
  0x16   :  { %p598_p10 = pnand %p596_p9, %p593_p8 }
  0x18   :  { %601 = shalt.err (!%p598_p10)
}
  0x19   :  { %s602_s6 = scalar_lea.vmem %s670_s15, 6144  ;;  %p607_p12 = scmp.lt.s32.totalorder %s670_s15, %s670_s15 }
  0x1a   :  { %p603_p11 = scmp.ne.s32.totalorder %s670_s15, %s602_s6  ;;  %p608_p13 = scmp.lt.s32.totalorder %s602_s6, %s602_s6 }
  0x1c   :  { %p609_p0 = por %p608_p13, %p607_p12 }
  0x1e   :  { %p610_p1 = pnand %p609_p0, %p603_p11 }
  0x20   :  { %613 = shalt.err (!%p610_p1)
}
  0x21   :  { %s644_s0 = smov 128   ;;  %s645_s7 = smov 8  }
  0x22   :  { %32 = dma.hbm_to_vmem [thread:$0]  %s747_s1, 6144, %s670_s15, [#allocation6], %s644_s0, %s644_s0, %s645_s7  }
  0x23   :  { %636 = dma.done.wait [#allocation3], 128  }
  0x24   :  { %637 = vsyncadd [#allocation3], 4294967168 }
  0x25   :  { %638 = dma.done.wait [#allocation6], 6144  }
  0x26   :  { %639 = vsyncadd [#allocation6], 4294961152  ;;  %v646_v0 = vmov 0.0|0.0   ;;  %vm647_vm0 = vmmov 0   ;;  %v648_v1 = vmov 0.0   ;;  %v43_v2 = vld [vmem:[#allocation5] sm:$0xff] }
  0x27   :  { %490 = vmatprep.subr.bf16.mxu0 %v646_v0  ;;  %417 = vmatprep.mubr.msk.f32.mxu0 %vm647_vm0, %v648_v1  ;;  %v44_v3 = vld [vmem:[#allocation5 + $0x8] sm:$0xff]  ;;  %v45_v4 = vld [vmem:[#allocation5 + $0x10] sm:$0xff]  ;;  %v46_v6 = vld [vmem:[#allocation5 + $0x18] sm:$0xff] }
  0x28   :  { %514 = vmatprep.subr.bf16.mxu1 %v646_v0  ;;  %452 = vmatprep.mubr.msk.f32.mxu1 %vm647_vm0, %v648_v1  ;;  %v491_v5 = vpack.c.bf16 %v44_v3, %v43_v2  ;;  %v494_v7 = vpack.c.bf16 %v46_v6, %v45_v4  ;;  %v47_v8 = vld [vmem:[#allocation5 + $0x20] sm:$0xff]  ;;  %v48_v9 = vld [vmem:[#allocation5 + $0x28] sm:$0xff]  ;;  %v137_v12 = vld [vmem:[#allocation5 + $0x90] sm:$0xff] }
  0x29   :  { %v135_v10 = vld [vmem:[#allocation5 + $0x80] sm:$0xff]  ;;  %v136_v11 = vld [vmem:[#allocation5 + $0x88] sm:$0xff]  ;;  %v138_v13 = vld [vmem:[#allocation5 + $0x98] sm:$0xff]  ;;  %v497_v14 = vpack.c.bf16 %v48_v9, %v47_v8  ;;  %v59_v9 = vlaneseq }
  0x2a   :  { %492 = vmatpush3.bf16.msra.mxu0 %v491_v5  ;;  %v515_v15 = vpack.c.bf16 %v136_v11, %v135_v10  ;;  %v49_v16 = vld [vmem:[#allocation5 + $0x30] sm:$0xff]  ;;  %v50_v17 = vld [vmem:[#allocation5 + $0x38] sm:$0xff]  ;;  %v518_v18 = vpack.c.bf16 %v138_v13, %v137_v12  ;;  %v139_v19 = vld [vmem:[#allocation5 + $0xa0] sm:$0xff] }
  0x2b   :  { %493 = vmatprep.subr.bf16.mxu0 %v646_v0  ;;  %v140_v20 = vld [vmem:[#allocation5 + $0xa8] sm:$0xff]  ;;  %v500_v21 = vpack.c.bf16 %v50_v17, %v49_v16  ;;  %v51_v22 = vld [vmem:[#allocation5 + $0x40] sm:$0xff]  ;;  %v141_v25 = vld [vmem:[#allocation5 + $0xb0] sm:$0xff]  ;;  %v60_v10 = vshrl.u32 %v59_v9, 7 }
  0x2c   :  { %516 = vmatpush3.bf16.msra.mxu1 %v515_v15  ;;  %v52_v23 = vld [vmem:[#allocation5 + $0x48] sm:$0xff]  ;;  %v521_v24 = vpack.c.bf16 %v140_v20, %v139_v19  ;;  %v142_v26 = vld [vmem:[#allocation5 + $0xb8] sm:$0xff]  ;;  %v53_v28 = vld [vmem:[#allocation5 + $0x50] sm:$0xff] }
  0x2d   :  { %517 = vmatprep.subr.bf16.mxu1 %v646_v0  ;;  %v503_v27 = vpack.c.bf16 %v52_v23, %v51_v22  ;;  %v54_v29 = vld [vmem:[#allocation5 + $0x58] sm:$0xff]  ;;  %v524_v30 = vpack.c.bf16 %v142_v26, %v141_v25  ;;  %v143_v31 = vld [vmem:[#allocation5 + $0xc0] sm:$0xff]  ;;  %v144_v32 = vld [vmem:[#allocation5 + $0xc8] sm:$0xff]  ;;  %v61_v11 = vsub.s32 0, %v60_v10  ;;  %v245_v26 = vsub.s32 2, %v60_v10 }
  0x2e   :  { %495 = vmatpush3.bf16.msra.mxu0 %v494_v7  ;;  %v506_v33 = vpack.c.bf16 %v54_v29, %v53_v28  ;;  %v55_v34 = vld [vmem:[#allocation5 + $0x60] sm:$0xff]  ;;  %v56_v35 = vld [vmem:[#allocation5 + $0x68] sm:$0xff]  ;;  %v527_v36 = vpack.c.bf16 %v144_v32, %v143_v31  ;;  %v145_v37 = vld [vmem:[#allocation5 + $0xd0] sm:$0xff] }
  0x2f   :  { %496 = vmatprep.subr.bf16.mxu0 %v646_v0  ;;  %v146_v38 = vld [vmem:[#allocation5 + $0xd8] sm:$0xff]  ;;  %v509_v39 = vpack.c.bf16 %v56_v35, %v55_v34  ;;  %v57_v40 = vld [vmem:[#allocation5 + $0x70] sm:$0xff]  ;;  %v147_v43 = vld [vmem:[#allocation5 + $0xe0] sm:$0xff] }
  0x30   :  { %519 = vmatpush3.bf16.msra.mxu1 %v518_v18  ;;  %v58_v41 = vld [vmem:[#allocation5 + $0x78] sm:$0xff]  ;;  %v530_v42 = vpack.c.bf16 %v146_v38, %v145_v37  ;;  %v148_v44 = vld [vmem:[#allocation5 + $0xe8] sm:$0xff]  ;;  %v149_v48 = vld [vmem:[#allocation5 + $0xf0] sm:$0xff] }
  0x31   :  { %520 = vmatprep.subr.bf16.mxu1 %v646_v0  ;;  %v512_v45 = vpack.c.bf16 %v58_v41, %v57_v40  ;;  %v533_v46 = vpack.c.bf16 %v148_v44, %v147_v43  ;;  %v41_v47 = vld [vmem:[#allocation2] sm:$0xff]  ;;  %v227_v51 = vld [vmem:[#allocation5 + $0x100] sm:$0xff]  ;;  %v228_v52 = vld [vmem:[#allocation5 + $0x108] sm:$0xff] }
  0x32   :  { %498 = vmatpush3.bf16.msra.mxu0 %v497_v14  ;;  %v150_v49 = vld [vmem:[#allocation5 + $0xf8] sm:$0xff]  ;;  %v229_v53 = vld [vmem:[#allocation5 + $0x110] sm:$0xff]  ;;  %v539_v54 = vpack.c.bf16 %v228_v52, %v227_v51  ;;  %v231_v57 = vld [vmem:[#allocation5 + $0x120] sm:$0xff] }
  0x33   :  { %499 = vmatprep.subr.bf16.mxu0 %v646_v0  ;;  %v536_v50 = vpack.c.bf16 %v150_v49, %v149_v48  ;;  %v230_v55 = vld [vmem:[#allocation5 + $0x118] sm:$0xff]  ;;  %v232_v58 = vld [vmem:[#allocation5 + $0x128] sm:$0xff]  ;;  %v233_v60 = vld [vmem:[#allocation5 + $0x130] sm:$0xff] }
  0x34   :  { %522 = vmatpush3.bf16.msra.mxu1 %v521_v24  ;;  %v542_v56 = vpack.c.bf16 %v230_v55, %v229_v53  ;;  %v545_v59 = vpack.c.bf16 %v232_v58, %v231_v57  ;;  %v234_v61 = vld [vmem:[#allocation5 + $0x138] sm:$0xff]  ;;  %v235_v63 = vld [vmem:[#allocation5 + $0x140] sm:$0xff]  ;;  %v237_v3 = vld [vmem:[#allocation5 + $0x150] sm:$0xff] }
  0x35   :  { %523 = vmatprep.subr.bf16.mxu1 %v646_v0  ;;  %v548_v62 = vpack.c.bf16 %v234_v61, %v233_v60  ;;  %v238_v4 = vld [vmem:[#allocation5 + $0x158] sm:$0xff]  ;;  %v239_v6 = vld [vmem:[#allocation5 + $0x160] sm:$0xff]  ;;  %v240_v7 = vld [vmem:[#allocation5 + $0x168] sm:$0xff] }
  0x36   :  { %501 = vmatpush3.bf16.msra.mxu0 %v500_v21  ;;  %v554_v5 = vpack.c.bf16 %v238_v4, %v237_v3  ;;  %v557_v8 = vpack.c.bf16 %v240_v7, %v239_v6  ;;  %v42_v12 = vld [vmem:[%s748_s2] sm:$0x7]  ;;  %v241_v18 = vld [vmem:[#allocation5 + $0x170] sm:$0xff]  ;;  %v153_v21 = vsub.s32 1, %v60_v10  ;;  %s649_s2 = smov [#allocation7]  }
  0x37   :  { %502 = vmatprep.subr.bf16.mxu0 %v646_v0  ;;  %v62_v13 = vrot.slane %v42_v12, %v61_v11  ;;  %v242_v19 = vld [vmem:[#allocation5 + $0x178] sm:$0xff]  ;;  %s324_s11 = sshll.u32 %s649_s2, 4  ;;  %s325_s11 = int_to_ptr.vmem [resolvable:$true] %s324_s11 }
  0x38   :  { %525 = vmatpush3.bf16.msra.mxu1 %v524_v30  ;;  %v560_v20 = vpack.c.bf16 %v242_v19, %v241_v18  ;;  %v154_v22 = vrot.slane %v42_v12, %v153_v21  ;;  %s614_s12 = scalar_lea.vmem %s325_s11, 128  ;;  %p619_p3 = scmp.lt.s32.totalorder %s325_s11, %s325_s11 }
  0x39   :  { %526 = vmatprep.subr.bf16.mxu1 %v646_v0  ;;  %p615_p2 = scmp.ne.s32.totalorder %s325_s11, %s614_s12  ;;  %p620_p4 = scmp.lt.s32.totalorder %s614_s12, %s614_s12 }
  0x3a   :  { %504 = vmatpush3.bf16.msra.mxu0 %v503_v27  ;;  %v246_v27 = vrot.slane %v42_v12, %v245_v26 }
  0x3b   :  { %505 = vmatprep.subr.bf16.mxu0 %v646_v0  ;;  %p621_p5 = por %p620_p4, %p619_p3 }
  0x3c   :  { %528 = vmatpush3.bf16.msra.mxu1 %v527_v36 }
  0x3d   :  { %529 = vmatprep.subr.bf16.mxu1 %v646_v0  ;;  %p622_p6 = pnand %p621_p5, %p615_p2 }
  0x3e   :  { %507 = vmatpush3.bf16.msra.mxu0 %v506_v33 }
  0x3f   :  { %508 = vmatprep.subr.bf16.mxu0 %v646_v0 }
  0x40   :  { %531 = vmatpush3.bf16.msra.mxu1 %v530_v42 }
  0x41   :  { %532 = vmatprep.subr.bf16.mxu1 %v646_v0 }
  0x42   :  { %510 = vmatpush3.bf16.msra.mxu0 %v509_v39 }
  0x43   :  { %511 = vmatprep.subr.bf16.mxu0 %v646_v0 }
  0x44   :  { %534 = vmatpush3.bf16.msra.mxu1 %v533_v46 }
  0x45   :  { %535 = vmatprep.subr.bf16.mxu1 %v646_v0 }
  0x46   :  { %513 = vmatpush3.bf16.msra.mxu0 %v512_v45 }
  0x47   :  { %538 = vmatprep.subr.bf16.mxu0 %v646_v0 }
  0x48   :  { %537 = vmatpush3.bf16.msra.mxu1 %v536_v50 }
  0x49   :  { %418 = vmatmul.mubr.f32.vlgmr.msra.gmra.mrb[0].mxu0 %v41_v47 }
  0x4a   :  { %487 = vmatprep.mubr.msk.f32.mxu0 %vm647_vm0, %v648_v1  ;;  %540 = vmatpush3.bf16.msra.mxu0 %v539_v54  ;;  %v236_v1 = vld [vmem:[#allocation5 + $0x148] sm:$0xff] }
  0x4b   :  { %541 = vmatprep.subr.bf16.mxu0 %v646_v0  ;;  %v551_v2 = vpack.c.bf16 %v236_v1, %v235_v63 }
  0x4e   :  { %543 = vmatpush3.bf16.msra.mxu0 %v542_v56 }
  0x4f   :  { %544 = vmatprep.subr.bf16.mxu0 %v646_v0 }
  0x52   :  { %546 = vmatpush3.bf16.msra.mxu0 %v545_v59 }
  0x53   :  { %547 = vmatprep.subr.bf16.mxu0 %v646_v0 }
  0x56   :  { %549 = vmatpush3.bf16.msra.mxu0 %v548_v62 }
  0x57   :  { %550 = vmatprep.subr.bf16.mxu0 %v646_v0 }
  0x5a   :  { %552 = vmatpush3.bf16.msra.mxu0 %v551_v2 }
  0x5b   :  { %553 = vmatprep.subr.bf16.mxu0 %v646_v0 }
  0x5e   :  { %555 = vmatpush3.bf16.msra.mxu0 %v554_v5 }
  0x5f   :  { %556 = vmatprep.subr.bf16.mxu0 %v646_v0 }
  0x62   :  { %558 = vmatpush3.bf16.msra.mxu0 %v557_v8 }
  0x63   :  { %559 = vmatprep.subr.bf16.mxu0 %v646_v0 }
  0x66   :  { %561 = vmatpush3.bf16.msra.mxu0 %v560_v20 }
 0x11c   :  { %v129_v14 = vpop.f32.mrb[0].mxu0 }
 0x11d   :  { %v130_v15 = vadd.f32 %v129_v14, %v62_v13  ;;  %v419_v16 = vpop.f32.mrb[1].mxu0 }
 0x11f   :  { %v133_v17 = vmax.f32 %v130_v15, 0.0 }
 0x121   :  { %453 = vmatmul.mubr.f32.vlgmr.msra.gmra.mrb[0].mxu1 %v133_v17 }
 0x1f4   :  { %v221_v0 = vpop.f32.mrb[0].mxu1 }
 0x1f5   :  { %v222_v23 = vadd.f32 %v221_v0, %v154_v22  ;;  %v454_v24 = vpop.f32.mrb[1].mxu1 }
 0x1f7   :  { %v225_v25 = vmax.f32 %v222_v23, 0.0 }
 0x1f9   :  { %488 = vmatmul.mubr.f32.vlgmr.msra.gmra.mrb[2].mxu0 %v225_v25 }
 0x2cc   :  { %v313_v28 = vpop.f32.mrb[2].mxu0 }
 0x2cd   :  { %v314_v29 = vadd.f32 %v313_v28, %v246_v27  ;;  %v489_v30 = vpop.f32.mrb[3].mxu0 }
 0x2cf   :  { %317 = vst [vmem:[#allocation7] sm:$0xff] %v314_v29 }
 0x2d0   :  { %625 = shalt.err (!%p622_p6)
}
 0x2d1   :  { %s626_s15 = scalar_lea.hbm %s749_s3, 128 }
 0x2d2   :  { %p627_p7 = scmp.ne.s32.totalorder %s749_s3, %s626_s15  ;;  %p630_p8 = scmp.lt.u32.totalorder %s626_s15, %s749_s3 }
 0x2d4   :  { %p632_p9 = pnand %p630_p8, %p627_p7 }
 0x2d6   :  { %635 = shalt.err (!%p632_p9)
}
 0x2d7   :  { %327 = dma.vmem_to_hbm [thread:$0]  %s325_s11, 128, %s749_s3, [#allocation4]  }
 0x2d8   :  { %640 = dma.done.wait [#allocation4], 128  }
 0x2d9   :  { %641 = vsyncadd [#allocation4], 4294967168 }
 0x2da   :  { %331 = vsyncpa [#allocation3], 1 }
 0x2db   :  { %332 = vsyncpa [#allocation6], 1 }
 0x2dc   :  { %333 = vsyncpa [#allocation4], 1 }

</bundles_post_ra>
